<compile_context>
chip_gen: v6e
topology: v6e:2x2x1
jax: 0.10.0
libtpu: 0.0.40
codegen_flags: <defaults>
</compile_context>

<pallas_src>
import jax
import jax.numpy as jnp
from jax.experimental import pallas as pl
from jax.experimental.pallas import tpu as pltpu


def _round_up(x, m):
    return ((x + m - 1) // m) * m


def _patch_embed_kernel(x_ref, w_ref, b_ref, o_ref):
    # x_ref: (TM, Kp) bf16 tile of flattened patches (streamed over the grid)
    # w_ref: (Kp, E)  bf16 projection matrix (resident across the whole grid)
    # b_ref: (1, E)   f32 bias (resident)
    # o_ref: (TM, E)  output tile (original activation dtype)
    acc = jnp.dot(x_ref[...], w_ref[...], preferred_element_type=jnp.float32)
    o_ref[...] = (acc + b_ref[...]).astype(o_ref.dtype)


def patch_embed(x, weight, bias, patch_size, *, tile_m=512,
                compute_dtype=jnp.bfloat16):
    """Forward pass of PatchEmbed.

    x: (B, C, H, W) NCHW activation (same layout as the PyTorch module).
    weight: (E, C, P, P) nn.Conv2d weight.  bias: (E,).
    Returns (B, (H//P)*(W//P), E)  ==  rearrange(conv(x), 'b c h w -> b (h w) c').
    """
    B, C, H, W = x.shape
    E = weight.shape[0]
    P = patch_size
    assert H % P == 0 and W % P == 0, "image size must be divisible by patch size"
    nh, nw = H // P, W // P
    N = nh * nw
    K = C * P * P
    M = B * N
    out_dtype = x.dtype

    # --- tiling / padding choices ----------------------------------------
    K_pad = _round_up(K, 128)                     # lane-align the contraction dim
    tm = max(8, min(tile_m, _round_up(M, 8)))     # M tile (sublane multiple)
    M_pad = _round_up(M, tm)
    grid_m = M_pad // tm

    # --- glue: patchify (+ pad + cast) in one fused XLA pass --------------
    # (B, C, nh, P, nw, P) -> (B, nh, nw, C, P, P) -> (M, K)   [conv ordering]
    patches = x.reshape(B, C, nh, P, nw, P)
    patches = jnp.transpose(patches, (0, 2, 4, 1, 3, 5)).reshape(M, K)
    patches = patches.astype(compute_dtype)
    if (M_pad, K_pad) != (M, K):
        patches = jnp.pad(patches, ((0, M_pad - M), (0, K_pad - K)))

    w_mat = weight.reshape(E, K).T.astype(compute_dtype)      # (K, E)
    if K_pad != K:
        w_mat = jnp.pad(w_mat, ((0, K_pad - K), (0, 0)))      # zero rows: no-op
    b_mat = bias.reshape(1, E).astype(jnp.float32)

    dsize = lambda a: a.size * a.dtype.itemsize
    cost = pl.CostEstimate(
        flops=2 * M_pad * K_pad * E,
        transcendentals=0,
        bytes_accessed=(dsize(patches) + dsize(w_mat) + dsize(b_mat)
                        + M_pad * E * jnp.dtype(out_dtype).itemsize),
    )

    out = pl.pallas_call(
        _patch_embed_kernel,
        out_shape=jax.ShapeDtypeStruct((M_pad, E), out_dtype),
        grid_spec=pltpu.PrefetchScalarGridSpec(
            num_scalar_prefetch=0,
            grid=(grid_m,),
            in_specs=[
                pl.BlockSpec((tm, K_pad), lambda i: (i, 0)),   # streamed over M
                pl.BlockSpec((K_pad, E), lambda i: (0, 0)),    # resident weight
                pl.BlockSpec((1, E), lambda i: (0, 0)),        # resident bias
            ],
            out_specs=pl.BlockSpec((tm, E), lambda i: (i, 0)),
        ),
        compiler_params=pltpu.CompilerParams(
            dimension_semantics=("parallel",),        # M tiles are independent
            vmem_limit_bytes=48 * 1024 * 1024,        # explicit; headroom on v7x
        ),
        cost_estimate=cost,
    )(patches, w_mat, b_mat)

    if M_pad != M:
        out = out[:M]
    return out.reshape(B, N, E)


if __name__ == "__main__":
    # Shapes matching the module defaults: img_size=32, patch_size=4,
    # in_channels=3, embed_dim=256 -> 64 patches per image.
    B, C, H, W = 2, 3, 32, 32
    P = 4
    E = 256

    key = jax.random.PRNGKey(0)
    kx, kw, kb = jax.random.split(key, 3)
    x = jax.random.normal(kx, (B, C, H, W), dtype=jnp.float32)
    # Deterministic synthetic parameters (shapes match nn.Conv2d(C, E, P, stride=P)).
    weight = jax.random.normal(kw, (E, C, P, P), dtype=jnp.float32) * 0.02
    bias = jax.random.normal(kb, (E,), dtype=jnp.float32) * 0.02

    out = patch_embed(x, weight, bias, P)
    out = jax.block_until_ready(out)

    # sanity: pure-JAX f32 reference (strided conv via patchify + dot)
    nh, nw = H // P, W // P
    ref_patches = jnp.transpose(
        x.reshape(B, C, nh, P, nw, P), (0, 2, 4, 1, 3, 5)
    ).reshape(B * nh * nw, C * P * P)
    ref = (ref_patches @ weight.reshape(E, -1).T + bias).reshape(B, nh * nw, E)

    assert out.shape == (B, nh * nw, E)
    # bf16 matmul inputs -> loosened tolerance vs the f32 reference
    assert jnp.allclose(out, ref, atol=2e-2, rtol=2e-2)

    print("KERNEL_OK")
</pallas_src>

<mosaic_0001>
module attributes {stable_mosaic.version = 11 : i64} {
  func.func @_patch_embed_kernel(%arg0: i32, %arg1: memref<128x128xbf16, #tpu.memory_space<vmem>>, %arg2: memref<128x256xbf16, #tpu.memory_space<vmem>>, %arg3: memref<1x256xf32, #tpu.memory_space<vmem>>, %arg4: memref<128x256xf32, #tpu.memory_space<vmem>>) attributes {dimension_semantics = [#tpu.dimension_semantics<parallel>], iteration_bounds = array<i64: 1>, scalar_prefetch = 0 : i64, scratch_operands = 0 : i64, tpu.core_type = #tpu.core_type<tc>, window_params = [{transform_indices = @transform_0, window_bounds = array<i64: 128, 128>}, {pipeline_mode = #tpu.pipeline_mode<synchronous>, transform_indices = @transform_1, window_bounds = array<i64: 128, 256>}, {pipeline_mode = #tpu.pipeline_mode<synchronous>, transform_indices = @transform_2, window_bounds = array<i64: 1, 256>}, {transform_indices = @transform_3, window_bounds = array<i64: 128, 256>}]} {
    %c0 = arith.constant 0 : index
    %c0_0 = arith.constant 0 : index
    %0 = vector.load %arg1[%c0, %c0_0] : memref<128x128xbf16, #tpu.memory_space<vmem>>, vector<128x128xbf16>
    %c0_1 = arith.constant 0 : index
    %c0_2 = arith.constant 0 : index
    %1 = vector.load %arg2[%c0_1, %c0_2] : memref<128x256xbf16, #tpu.memory_space<vmem>>, vector<128x256xbf16>
    %cst = arith.constant dense<0.000000e+00> : vector<128x256xf32>
    %2 = tpu.matmul %0, %1, %cst {dimension_numbers = #tpu.dot_dimension_numbers<[1], [0], [0], [1], [0, 0, 1, 1], [], []>} : vector<128x128xbf16>, vector<128x256xbf16>, vector<128x256xf32> -> vector<128x256xf32>
    %c0_3 = arith.constant 0 : index
    %c0_4 = arith.constant 0 : index
    %3 = vector.load %arg3[%c0_3, %c0_4] : memref<1x256xf32, #tpu.memory_space<vmem>>, vector<1x256xf32>
    %4 = vector.broadcast %3 : vector<1x256xf32> to vector<128x256xf32>
    %5 = arith.addf %2, %4 : vector<128x256xf32>
    %c0_5 = arith.constant 0 : index
    %c0_6 = arith.constant 0 : index
    %6 = vector.load %arg4[%c0_5, %c0_6] : memref<128x256xf32, #tpu.memory_space<vmem>>, vector<128x256xf32>
    tpu.vector_store %arg4[%c0_5, %c0_6], %5 {strides = array<i32>} : memref<128x256xf32, #tpu.memory_space<vmem>>, vector<128x256xf32>,
    return
  }
  func.func @transform_0(%arg0: i32) -> (i32, i32) {
    %c0_i32 = arith.constant 0 : i32
    %c0_i32_0 = arith.constant 0 : i32
    return %arg0, %c0_i32 : i32, i32
  }
  func.func @transform_1(%arg0: i32) -> (i32, i32) {
    %c0_i32 = arith.constant 0 : i32
    %c0_i32_0 = arith.constant 0 : i32
    %c0_i32_1 = arith.constant 0 : i32
    return %c0_i32, %c0_i32_0 : i32, i32
  }
  func.func @transform_2(%arg0: i32) -> (i32, i32) {
    %c0_i32 = arith.constant 0 : i32
    %c0_i32_0 = arith.constant 0 : i32
    %c0_i32_1 = arith.constant 0 : i32
    return %c0_i32, %c0_i32_0 : i32, i32
  }
  func.func @transform_3(%arg0: i32) -> (i32, i32) {
    %c0_i32 = arith.constant 0 : i32
    %c0_i32_0 = arith.constant 0 : i32
    return %arg0, %c0_i32 : i32, i32
  }
}

</mosaic_0001>

<bundles_post_ra>
// kernel: tpu_custom_call.1
= control target key start
LH: loop header
LB: loop body
LE: loop exit
PB: predicated region body
PF: predicated region fallthrough
CT: control target
= control target key end

     0   :  { %8 = vsyncpa [#allocation3], 0  ;;  %s613_s0 = inlined_call_operand.hbm [shape: bf16[128,128], index: 0, kind: input, shape index: {}]   ;;  %s614_s1 = inlined_call_operand.hbm [shape: bf16[128,256], index: 1, kind: input, shape index: {}]   ;;  %s615_s2 = inlined_call_operand.vmem [shape: f32[1,256], index: 2, kind: input, shape index: {}]   ;;  %s616_s3 = inlined_call_operand.hbm [shape: f32[128,256], index: 3, kind: output, shape index: {}]  }
   0x1   :  { %9 = vsyncpa [#allocation6], 0 }
   0x2   :  { %10 = vsyncpa [#allocation4], 0  ;;  %s527_s12 = smov [#allocation2]  }
   0x3   :  { %s16_s13 = sshll.u32 %s527_s12, 4  ;;  %s17_s13 = int_to_ptr.vmem [resolvable:$true] %s16_s13 }
   0x4   :  { %s469_s14 = scalar_lea.vmem %s17_s13, 1024  ;;  %p474_p1 = scmp.lt.s32.totalorder %s17_s13, %s17_s13 }
   0x5   :  { %p470_p0 = scmp.ne.s32.totalorder %s17_s13, %s469_s14  ;;  %p475_p2 = scmp.lt.s32.totalorder %s469_s14, %s469_s14 }
   0x7   :  { %p476_p3 = por %p475_p2, %p474_p1 }
   0x9   :  { %p477_p4 = pnand %p476_p3, %p470_p0 }
   0xb   :  { %480 = shalt.err (!%p477_p4)
}
   0xc   :  { %s528_s15 = smov 64   ;;  %s529_s16 = smov 4  }
   0xd   :  { %22 = dma.hbm_to_vmem [thread:$0]  %s613_s0, 1024, %s17_s13, [#allocation3], %s528_s15, %s528_s15, %s529_s16  }
   0xe   :  { %s530_s19 = smov [#allocation5]  }
   0xf   :  { %s28_s20 = sshll.u32 %s530_s19, 4  ;;  %s29_s20 = int_to_ptr.vmem [resolvable:$true] %s28_s20 }
  0x10   :  { %s489_s21 = scalar_lea.vmem %s29_s20, 2048  ;;  %p494_p6 = scmp.lt.s32.totalorder %s29_s20, %s29_s20 }
  0x11   :  { %p490_p5 = scmp.ne.s32.totalorder %s29_s20, %s489_s21  ;;  %p495_p7 = scmp.lt.s32.totalorder %s489_s21, %s489_s21 }
  0x13   :  { %p496_p8 = por %p495_p7, %p494_p6 }
  0x15   :  { %p497_p9 = pnand %p496_p8, %p490_p5 }
  0x17   :  { %500 = shalt.err (!%p497_p9)
}
  0x18   :  { %s531_s22 = smov 128   ;;  %s532_s23 = smov 8  }
  0x19   :  { %34 = dma.hbm_to_vmem [thread:$0]  %s614_s1, 2048, %s29_s20, [#allocation6], %s531_s22, %s531_s22, %s532_s23  }
  0x1a   :  { %521 = dma.done.wait [#allocation3], 1024  }
  0x1b   :  { %522 = vsyncadd [#allocation3], 4294966272 }
  0x1c   :  { %523 = dma.done.wait [#allocation6], 2048  }
  0x1d   :  { %524 = vsyncadd [#allocation6], 4294965248  ;;  %v533_v0 = vmov 0   ;;  %v429_v1 = vld [vmem:[#allocation5 + $0x74] ss:$8 sps:$4 sm:$0xff]   ;;  %v453_v17 = vld [vmem:[#allocation2] sm:$0xff]   ;;  %v78_v25 = vlaneseq }
  0x1e   :  { %248 = vmatprep.mubr.bf16.mxu0 %v533_v0  ;;  %288 = vmatprep.mubr.bf16.mxu1 %v533_v0  ;;  %v431_v2 = vld [vmem:[#allocation5 + $0x70] ss:$8 sps:$4 sm:$0xff]   ;;  %v432_v3 = vld [vmem:[#allocation5 + $0x64] ss:$8 sps:$4 sm:$0xff]   ;;  %v434_v4 = vld [vmem:[#allocation5 + $0x60] ss:$8 sps:$4 sm:$0xff]  }
  0x1f   :  { %216 = vmatprep.subr.bf16.mxu0 %v429_v1  ;;  %403 = vmatprep.subr.bf16.mxu1 %v429_v1  ;;  %v435_v5 = vld [vmem:[#allocation5 + $0x54] ss:$8 sps:$4 sm:$0xff]   ;;  %v437_v6 = vld [vmem:[#allocation5 + $0x50] ss:$8 sps:$4 sm:$0xff]   ;;  %v438_v7 = vld [vmem:[#allocation5 + $0x44] ss:$8 sps:$4 sm:$0xff]  }
  0x20   :  { %217 = vmatpush1.bf16.msra.mxu0 %v431_v2  ;;  %411 = vmatpush1.bf16.msra.mxu1 %v431_v2  ;;  %v440_v8 = vld [vmem:[#allocation5 + $0x40] ss:$8 sps:$4 sm:$0xff]   ;;  %v441_v9 = vld [vmem:[#allocation5 + $0x34] ss:$8 sps:$4 sm:$0xff]   ;;  %v443_v10 = vld [vmem:[#allocation5 + $0x30] ss:$8 sps:$4 sm:$0xff]  }
  0x21   :  { %218 = vmatprep.subr.bf16.mxu0 %v432_v3  ;;  %404 = vmatprep.subr.bf16.mxu1 %v432_v3  ;;  %v444_v11 = vld [vmem:[#allocation5 + $0x24] ss:$8 sps:$4 sm:$0xff]   ;;  %v446_v12 = vld [vmem:[#allocation5 + $0x20] ss:$8 sps:$4 sm:$0xff]   ;;  %v447_v13 = vld [vmem:[#allocation5 + $0x14] ss:$8 sps:$4 sm:$0xff]  }
  0x22   :  { %v449_v14 = vld [vmem:[#allocation5 + $0x10] ss:$8 sps:$4 sm:$0xff]   ;;  %v450_v15 = vld [vmem:[#allocation5 + $0x4] ss:$8 sps:$4 sm:$0xff]   ;;  %v452_v16 = vld [vmem:[#allocation5] ss:$8 sps:$4 sm:$0xff]  }
  0x23   :  { %v454_v18 = vld [vmem:[#allocation2 + $0x20] sm:$0xff]   ;;  %v455_v19 = vld [vmem:[#allocation2 + $0x8] sm:$0xff]   ;;  %v457_v21 = vld [vmem:[#allocation2 + $0x10] sm:$0xff]   ;;  %v79_v26 = vshrl.u32 %v78_v25, 7 }
  0x24   :  { %219 = vmatpush1.bf16.msra.mxu0 %v434_v4  ;;  %412 = vmatpush1.bf16.msra.mxu1 %v434_v4  ;;  %v456_v20 = vld [vmem:[#allocation2 + $0x28] sm:$0xff]   ;;  %v458_v22 = vld [vmem:[#allocation2 + $0x30] sm:$0xff]   ;;  %v459_v23 = vld [vmem:[#allocation2 + $0x18] sm:$0xff]  }
  0x25   :  { %220 = vmatprep.subr.bf16.mxu0 %v435_v5  ;;  %405 = vmatprep.subr.bf16.mxu1 %v435_v5  ;;  %v460_v24 = vld [vmem:[#allocation2 + $0x38] sm:$0xff]   ;;  %v80_v27 = vsub.s32 0, %v79_v26  ;;  %v76_v28 = vld [vmem:[%s615_s2] sm:$0x3]  ;;  %v84_v29 = vsub.s32 1, %v79_v26  ;;  %s534_s2 = smov [#allocation7]  }
  0x26   :  { %s366_s26 = sshll.u32 %s534_s2, 4  ;;  %s367_s26 = int_to_ptr.vmem [resolvable:$true] %s366_s26 }
  0x27   :  { %v574_v30 = vrot.slane %v76_v28, %v80_v27  ;;  %v576_v31 = vrot.slane %v76_v28, %v84_v29  ;;  %s501_s27 = scalar_lea.vmem %s367_s26, 4096  ;;  %p506_p11 = scmp.lt.s32.totalorder %s367_s26, %s367_s26 }
  0x28   :  { %221 = vmatpush1.bf16.msra.mxu0 %v437_v6  ;;  %413 = vmatpush1.bf16.msra.mxu1 %v437_v6  ;;  %p502_p10 = scmp.ne.s32.totalorder %s367_s26, %s501_s27  ;;  %p507_p12 = scmp.lt.s32.totalorder %s501_s27, %s501_s27 }
  0x29   :  { %222 = vmatprep.subr.bf16.mxu0 %v438_v7  ;;  %406 = vmatprep.subr.bf16.mxu1 %v438_v7 }
  0x2a   :  { %p508_p13 = por %p507_p12, %p506_p11 }
  0x2c   :  { %223 = vmatpush1.bf16.msra.mxu0 %v440_v8  ;;  %414 = vmatpush1.bf16.msra.mxu1 %v440_v8  ;;  %p509_p0 = pnand %p508_p13, %p502_p10 }
  0x2d   :  { %224 = vmatprep.subr.bf16.mxu0 %v441_v9  ;;  %407 = vmatprep.subr.bf16.mxu1 %v441_v9 }
  0x30   :  { %225 = vmatpush1.bf16.msra.mxu0 %v443_v10  ;;  %415 = vmatpush1.bf16.msra.mxu1 %v443_v10 }
  0x31   :  { %226 = vmatprep.subr.bf16.mxu0 %v444_v11  ;;  %408 = vmatprep.subr.bf16.mxu1 %v444_v11 }
  0x34   :  { %227 = vmatpush1.bf16.msra.mxu0 %v446_v12  ;;  %416 = vmatpush1.bf16.msra.mxu1 %v446_v12 }
  0x35   :  { %228 = vmatprep.subr.bf16.mxu0 %v447_v13  ;;  %409 = vmatprep.subr.bf16.mxu1 %v447_v13 }
  0x38   :  { %229 = vmatpush1.bf16.msra.mxu0 %v449_v14  ;;  %417 = vmatpush1.bf16.msra.mxu1 %v449_v14 }
  0x39   :  { %230 = vmatprep.subr.bf16.mxu0 %v450_v15  ;;  %410 = vmatprep.subr.bf16.mxu1 %v450_v15 }
  0x3c   :  { %231 = vmatpush1.bf16.msra.mxu0 %v452_v16  ;;  %418 = vmatpush1.bf16.msra.mxu1 %v452_v16 }
  0x3f   :  { %249 = vmatmul.mubr.bf16.vlgmr.msra.gmra.mxu0 %v453_v17  ;;  %289 = vmatmul.mubr.bf16.vlgmr.msra.gmra.mxu1 %v454_v18 }
  0x40   :  { %258 = vmatprep.mubr.bf16.mxu0 %v533_v0  ;;  %298 = vmatprep.mubr.bf16.mxu1 %v533_v0 }
  0x47   :  { %259 = vmatmul.mubr.bf16.gmra.mxu0 %v455_v19  ;;  %299 = vmatmul.mubr.bf16.gmra.mxu1 %v456_v20 }
  0x48   :  { %268 = vmatprep.mubr.bf16.mxu0 %v533_v0  ;;  %308 = vmatprep.mubr.bf16.mxu1 %v533_v0 }
  0x4f   :  { %269 = vmatmul.mubr.bf16.gmra.mxu0 %v457_v21  ;;  %309 = vmatmul.mubr.bf16.gmra.mxu1 %v458_v22 }
  0x50   :  { %278 = vmatprep.mubr.bf16.mxu0 %v533_v0  ;;  %318 = vmatprep.mubr.bf16.mxu1 %v533_v0 }
  0x57   :  { %279 = vmatmul.mubr.bf16.gmra.mxu0 %v459_v23  ;;  %319 = vmatmul.mubr.bf16.gmra.mxu1 %v460_v24 }
  0xff   :  { %v250_v32 = vpop.f32.mrf.mxu0  ;;  %v290_v33 = vpop.f32.mrf.mxu1 }
 0x100   :  { %v251_v34 = vadd.f32 %v250_v32, %v574_v30  ;;  %v291_v35 = vadd.f32 %v290_v33, %v574_v30 }
 0x101   :  { %v252_v36 = vpop.f32.mrf.mxu0  ;;  %v292_v37 = vpop.f32.mrf.mxu1 }
 0x102   :  { %329 = vst [vmem:[#allocation7] sm:$0xff] %v251_v34  ;;  %345 = vst [vmem:[#allocation7 + $0x80] sm:$0xff] %v291_v35  ;;  %v253_v38 = vadd.f32 %v252_v36, %v576_v31  ;;  %v293_v39 = vadd.f32 %v292_v37, %v576_v31 }
 0x103   :  { %v254_v40 = vpop.f32.mrf.mxu0  ;;  %v294_v41 = vpop.f32.mrf.mxu1 }
 0x104   :  { %330 = vst [vmem:[#allocation7 + $0x8] sm:$0xff] %v253_v38  ;;  %346 = vst [vmem:[#allocation7 + $0x88] sm:$0xff] %v293_v39  ;;  %v255_v42 = vadd.f32 %v254_v40, %v574_v30  ;;  %v295_v43 = vadd.f32 %v294_v41, %v574_v30 }
 0x105   :  { %v256_v44 = vpop.f32.mrf.mxu0  ;;  %v296_v45 = vpop.f32.mrf.mxu1 }
 0x106   :  { %331 = vst [vmem:[#allocation7 + $0x10] sm:$0xff] %v255_v42  ;;  %347 = vst [vmem:[#allocation7 + $0x90] sm:$0xff] %v295_v43  ;;  %v257_v46 = vadd.f32 %v256_v44, %v576_v31  ;;  %v297_v47 = vadd.f32 %v296_v45, %v576_v31 }
 0x107   :  { %v260_v48 = vpop.f32.mrf.mxu0  ;;  %v300_v49 = vpop.f32.mrf.mxu1 }
 0x108   :  { %332 = vst [vmem:[#allocation7 + $0x18] sm:$0xff] %v257_v46  ;;  %348 = vst [vmem:[#allocation7 + $0x98] sm:$0xff] %v297_v47  ;;  %v261_v50 = vadd.f32 %v260_v48, %v574_v30  ;;  %v301_v51 = vadd.f32 %v300_v49, %v574_v30 }
 0x109   :  { %v262_v52 = vpop.f32.mrf.mxu0  ;;  %v302_v53 = vpop.f32.mrf.mxu1 }
 0x10a   :  { %333 = vst [vmem:[#allocation7 + $0x20] sm:$0xff] %v261_v50  ;;  %349 = vst [vmem:[#allocation7 + $0xa0] sm:$0xff] %v301_v51  ;;  %v263_v54 = vadd.f32 %v262_v52, %v576_v31  ;;  %v303_v55 = vadd.f32 %v302_v53, %v576_v31 }
 0x10b   :  { %v264_v56 = vpop.f32.mrf.mxu0  ;;  %v304_v57 = vpop.f32.mrf.mxu1 }
 0x10c   :  { %334 = vst [vmem:[#allocation7 + $0x28] sm:$0xff] %v263_v54  ;;  %350 = vst [vmem:[#allocation7 + $0xa8] sm:$0xff] %v303_v55  ;;  %v265_v58 = vadd.f32 %v264_v56, %v574_v30  ;;  %v305_v59 = vadd.f32 %v304_v57, %v574_v30 }
 0x10d   :  { %v266_v60 = vpop.f32.mrf.mxu0  ;;  %v306_v61 = vpop.f32.mrf.mxu1 }
 0x10e   :  { %335 = vst [vmem:[#allocation7 + $0x30] sm:$0xff] %v265_v58  ;;  %351 = vst [vmem:[#allocation7 + $0xb0] sm:$0xff] %v305_v59  ;;  %v267_v62 = vadd.f32 %v266_v60, %v576_v31  ;;  %v307_v63 = vadd.f32 %v306_v61, %v576_v31 }
 0x10f   :  { %v270_v0 = vpop.f32.mrf.mxu0  ;;  %v310_v1 = vpop.f32.mrf.mxu1 }
 0x110   :  { %336 = vst [vmem:[#allocation7 + $0x38] sm:$0xff] %v267_v62  ;;  %352 = vst [vmem:[#allocation7 + $0xb8] sm:$0xff] %v307_v63  ;;  %v271_v2 = vadd.f32 %v270_v0, %v574_v30  ;;  %v311_v3 = vadd.f32 %v310_v1, %v574_v30 }
 0x111   :  { %v272_v4 = vpop.f32.mrf.mxu0  ;;  %v312_v5 = vpop.f32.mrf.mxu1 }
 0x112   :  { %337 = vst [vmem:[#allocation7 + $0x40] sm:$0xff] %v271_v2  ;;  %353 = vst [vmem:[#allocation7 + $0xc0] sm:$0xff] %v311_v3  ;;  %v273_v6 = vadd.f32 %v272_v4, %v576_v31  ;;  %v313_v7 = vadd.f32 %v312_v5, %v576_v31 }
 0x113   :  { %v274_v8 = vpop.f32.mrf.mxu0  ;;  %v314_v9 = vpop.f32.mrf.mxu1 }
 0x114   :  { %338 = vst [vmem:[#allocation7 + $0x48] sm:$0xff] %v273_v6  ;;  %354 = vst [vmem:[#allocation7 + $0xc8] sm:$0xff] %v313_v7  ;;  %v275_v10 = vadd.f32 %v274_v8, %v574_v30  ;;  %v315_v11 = vadd.f32 %v314_v9, %v574_v30 }
 0x115   :  { %v276_v12 = vpop.f32.mrf.mxu0  ;;  %v316_v13 = vpop.f32.mrf.mxu1 }
 0x116   :  { %339 = vst [vmem:[#allocation7 + $0x50] sm:$0xff] %v275_v10  ;;  %355 = vst [vmem:[#allocation7 + $0xd0] sm:$0xff] %v315_v11  ;;  %v277_v14 = vadd.f32 %v276_v12, %v576_v31  ;;  %v317_v15 = vadd.f32 %v316_v13, %v576_v31 }
 0x117   :  { %v280_v16 = vpop.f32.mrf.mxu0  ;;  %v320_v17 = vpop.f32.mrf.mxu1 }
 0x118   :  { %340 = vst [vmem:[#allocation7 + $0x58] sm:$0xff] %v277_v14  ;;  %356 = vst [vmem:[#allocation7 + $0xd8] sm:$0xff] %v317_v15  ;;  %v281_v18 = vadd.f32 %v280_v16, %v574_v30  ;;  %v321_v19 = vadd.f32 %v320_v17, %v574_v30 }
 0x119   :  { %v282_v20 = vpop.f32.mrf.mxu0  ;;  %v322_v21 = vpop.f32.mrf.mxu1 }
 0x11a   :  { %341 = vst [vmem:[#allocation7 + $0x60] sm:$0xff] %v281_v18  ;;  %357 = vst [vmem:[#allocation7 + $0xe0] sm:$0xff] %v321_v19  ;;  %v283_v22 = vadd.f32 %v282_v20, %v576_v31  ;;  %v323_v23 = vadd.f32 %v322_v21, %v576_v31 }
 0x11b   :  { %v284_v24 = vpop.f32.mrf.mxu0  ;;  %v324_v25 = vpop.f32.mrf.mxu1 }
 0x11c   :  { %342 = vst [vmem:[#allocation7 + $0x68] sm:$0xff] %v283_v22  ;;  %358 = vst [vmem:[#allocation7 + $0xe8] sm:$0xff] %v323_v23  ;;  %v285_v26 = vadd.f32 %v284_v24, %v574_v30  ;;  %v325_v27 = vadd.f32 %v324_v25, %v574_v30 }
 0x11d   :  { %v286_v28 = vpop.f32.mrf.mxu0  ;;  %v326_v29 = vpop.f32.mrf.mxu1 }
 0x11e   :  { %343 = vst [vmem:[#allocation7 + $0x70] sm:$0xff] %v285_v26  ;;  %359 = vst [vmem:[#allocation7 + $0xf0] sm:$0xff] %v325_v27  ;;  %v287_v32 = vadd.f32 %v286_v28, %v576_v31  ;;  %v327_v33 = vadd.f32 %v326_v29, %v576_v31 }
 0x120   :  { %344 = vst [vmem:[#allocation7 + $0x78] sm:$0xff] %v287_v32  ;;  %360 = vst [vmem:[#allocation7 + $0xf8] sm:$0xff] %v327_v33 }
 0x121   :  { %512 = shalt.err (!%p509_p0)
}
 0x122   :  { %s535_s28 = smov 256   ;;  %s536_s29 = smov 16  }
 0x123   :  { %372 = dma.vmem_to_hbm [thread:$0]  %s367_s26, 4096, %s616_s3, [#allocation4], %s535_s28, %s535_s28, %s536_s29  }
 0x124   :  { %525 = dma.done.wait [#allocation4], 4096  }
 0x125   :  { %526 = vsyncadd [#allocation4], 4294963200 }
 0x126   :  { %376 = vsyncpa [#allocation3], 1 }
 0x127   :  { %377 = vsyncpa [#allocation6], 1 }
 0x128   :  { %378 = vsyncpa [#allocation4], 1 }

</bundles_post_ra>
